<compile_context>
chip_gen: v6e
topology: v6e:2x2x1
jax: 0.10.0
libtpu: 0.0.40
codegen_flags: <defaults>
</compile_context>

<pallas_src>
import functools

import jax
import jax.numpy as jnp
import numpy as np
from jax import lax
from jax.experimental import pallas as pl
from jax.experimental.pallas import tpu as pltpu


def _round_up(x, m):
    return ((x + m - 1) // m) * m


_VMEM_LIMIT_CACHE = None


def _vmem_limit_bytes():
    # Per-generation scoped-VMEM budget: ~3/4 of physical (96 MiB on v5e/v6e,
    # 48 MiB on v7x), capped at 100 MiB.
    global _VMEM_LIMIT_CACHE
    if _VMEM_LIMIT_CACHE is None:
        try:
            cap = int(pltpu.get_tpu_info().vmem_capacity_bytes)
        except Exception:
            cap = 128 * 1024 * 1024
        _VMEM_LIMIT_CACHE = min(int(cap * 3 // 4), 100 * 1024 * 1024)
    return _VMEM_LIMIT_CACHE


# ----------------------------------------------------------------------------
# Static helpers for the flattened-HW 3x3x3 conv (halo via roll + mask)
# ----------------------------------------------------------------------------

def _tap_masks(H, W, HWp):
    # (9, HWp) f32 validity masks for the 9 (kh, kw) taps of a 3x3 spatial halo
    # on the flattened (row-major) HW axis padded to HWp lanes.
    n = np.arange(HWp)
    h = n // W
    w = n % W
    valid = n < H * W
    rows = []
    for kh in range(3):
        for kw in range(3):
            hh = h + kh - 1
            ww = w + kw - 1
            m = valid & (hh >= 0) & (hh < H) & (ww >= 0) & (ww < W)
            rows.append(m.astype(np.float32))
    return jnp.asarray(np.stack(rows, axis=0))


def _tap_roll_shifts(W, HWp):
    # Lane-roll amounts so that rolled[n] == x[n + (kh-1)*W + (kw-1)].
    shifts = []
    for kh in range(3):
        for kw in range(3):
            s = (kh - 1) * W + (kw - 1)
            shifts.append((-s) % HWp)
    return tuple(shifts)


def _accum_taps(x, wread, mask_rows, roll_shifts, a0, a1, a2):
    # x: (D, HWp) f32 single channel.  wread(j, t) -> f32 scalar (SMEM read).
    # Accumulates the 9 spatial taps into the three per-kd accumulators.
    for t, rs in enumerate(roll_shifts):
        xt = x if rs == 0 else pltpu.roll(x, shift=rs, axis=1)
        xt = xt * mask_rows[t]
        a0 = a0 + xt * wread(0, t)
        a1 = a1 + xt * wread(1, t)
        a2 = a2 + xt * wread(2, t)
    return a0, a1, a2


def _combine_depth_taps(a0, a1, a2):
    # o[d] = a0[d-1] + a1[d] + a2[d+1]  (zero-padded along depth)
    d = a0.shape[0]
    di = lax.broadcasted_iota(jnp.int32, a0.shape, 0)
    down = jnp.where(di >= 1, pltpu.roll(a0, shift=1, axis=0), 0.0)
    up = jnp.where(di <= d - 2, pltpu.roll(a2, shift=(d - 1) % d, axis=0), 0.0)
    return a1 + down + up


# ----------------------------------------------------------------------------
# Pallas kernels
# ----------------------------------------------------------------------------

def _matmul_kernel(x_ref, w_ref, o_ref):
    # 1x1-conv as matmul on the MXU; bf16 inputs, f32 accumulation.
    o_ref[...] = jnp.dot(x_ref[...], w_ref[...], preferred_element_type=jnp.float32)


def pallas_matmul(x, w, tile_rows=512):
    # x: (M, K) f32, w: (K, N) f32 -> (M, N) f32.  Lane-dense (N padded to 128)
    # output, bf16 MXU inputs, gridded over row tiles.
    M, K = x.shape
    _, N = w.shape
    Np = _round_up(N, 128)
    tile = min(tile_rows, _round_up(M, 8))
    Mp = _round_up(M, tile)
    x_p = jnp.pad(x, ((0, Mp - M), (0, 0))).astype(jnp.bfloat16)
    w_p = jnp.pad(w, ((0, 0), (0, Np - N))).astype(jnp.bfloat16)
    out = pl.pallas_call(
        _matmul_kernel,
        out_shape=jax.ShapeDtypeStruct((Mp, Np), jnp.float32),
        grid_spec=pltpu.PrefetchScalarGridSpec(
            num_scalar_prefetch=0,
            grid=(Mp // tile,),
            in_specs=[pl.BlockSpec((tile, K), lambda i: (i, 0)),
                      pl.BlockSpec((K, Np), lambda i: (0, 0))],
            out_specs=pl.BlockSpec((tile, Np), lambda i: (i, 0))),
        compiler_params=pltpu.CompilerParams(
            dimension_semantics=("parallel",),
            vmem_limit_bytes=_vmem_limit_bytes()),
    )(x_p, w_p)
    return out[:M, :N]


def _costagg_kernel(ref_ref, warp_ref, masks_ref, w_ref, o_ref, acc_ref, *,
                    roll_shifts, tc):
    # ref:   (1, TC, HWp)       f32 reference feature channels (chunk)
    # warp:  (1, TC, D, HWp)    bf16 warped source feature channels (chunk)
    # masks: (9, HWp)           f32 halo validity masks
    # w:     (C, 27)            f32 Conv3d(C->1, 3x3x3) weights in SMEM
    # o:     (1, D, HWp)        bf16 cost slice for this (batch, view)
    # acc:   (3, D, HWp)        f32 per-kd accumulators (persist across chunks)
    cc = pl.program_id(1)

    @pl.when(cc == 0)
    def _():
        acc_ref[...] = jnp.zeros_like(acc_ref)

    mask_rows = [masks_ref[t:t + 1, :] for t in range(9)]
    a0 = acc_ref[0]
    a1 = acc_ref[1]
    a2 = acc_ref[2]
    c0 = cc * tc
    for c in range(tc):
        prod = (warp_ref[0, c, :, :].astype(jnp.float32)
                * ref_ref[0, c:c + 1, :].astype(jnp.float32))
        ch = c0 + c
        wread = lambda j, t, ch=ch: w_ref[ch, j * 9 + t]
        a0, a1, a2 = _accum_taps(prod, wread, mask_rows, roll_shifts, a0, a1, a2)
    acc_ref[0] = a0
    acc_ref[1] = a1
    acc_ref[2] = a2

    @pl.when(cc == pl.num_programs(1) - 1)
    def _():
        o_ref[0] = _combine_depth_taps(a0, a1, a2).astype(o_ref.dtype)


def pallas_costagg(ref_flat, warped, w, masks, W, tc=8):
    # ref_flat: (B, C, HWp) f32, warped: (B*V, C, D, HWp) bf16, w: (C, 27) f32,
    # masks: (9, HWp) f32  ->  (B, V, D, HWp) bf16 cost volume.
    B, C, HWp = ref_flat.shape
    BV, _, D, _ = warped.shape
    V = BV // B
    tc = tc if (C % tc == 0) else C
    n_cc = C // tc
    roll_shifts = _tap_roll_shifts(W, HWp)
    kern = functools.partial(_costagg_kernel, roll_shifts=roll_shifts, tc=tc)
    out = pl.pallas_call(
        kern,
        out_shape=jax.ShapeDtypeStruct((BV, D, HWp), jnp.bfloat16),
        grid_spec=pltpu.PrefetchScalarGridSpec(
            num_scalar_prefetch=0,
            grid=(BV, n_cc),
            in_specs=[
                pl.BlockSpec((1, tc, HWp), lambda bv, cc: (bv // V, cc, 0)),
                pl.BlockSpec((1, tc, D, HWp), lambda bv, cc: (bv, cc, 0, 0)),
                pl.BlockSpec((9, HWp), lambda bv, cc: (0, 0)),
                pl.BlockSpec(memory_space=pltpu.MemorySpace.SMEM),
            ],
            out_specs=pl.BlockSpec((1, D, HWp), lambda bv, cc: (bv, 0, 0)),
            scratch_shapes=[pltpu.VMEM((3, D, HWp), jnp.float32)]),
        compiler_params=pltpu.CompilerParams(
            dimension_semantics=("parallel", "arbitrary"),
            vmem_limit_bytes=_vmem_limit_bytes()),
    )(ref_flat, warped, masks, w)
    return out.reshape(B, V, D, HWp)


def _costreg_kernel(cost_ref, masks_ref, dv_ref, w_ref,
                    depth_ref, conf_ref, prob_ref, acc_ref, *, roll_shifts):
    # Fused cost regularization (stand-in Conv3d V->1, reduced over the view
    # grid axis) + softmax over depth + winner-take-all depth + confidence.
    # cost: (1, 1, D, HWp) bf16   masks: (9, HWp) f32   dv: (1, D, HWp) f32
    # w:    (V, 27) f32 in SMEM
    v = pl.program_id(1)

    @pl.when(v == 0)
    def _():
        acc_ref[...] = jnp.zeros_like(acc_ref)

    mask_rows = [masks_ref[t:t + 1, :] for t in range(9)]
    x = cost_ref[0, 0, :, :].astype(jnp.float32)
    wread = lambda j, t: w_ref[v, j * 9 + t]
    a0, a1, a2 = _accum_taps(x, wread, mask_rows, roll_shifts,
                             acc_ref[0], acc_ref[1], acc_ref[2])
    acc_ref[0] = a0
    acc_ref[1] = a1
    acc_ref[2] = a2

    @pl.when(v == pl.num_programs(1) - 1)
    def _():
        cost = _combine_depth_taps(a0, a1, a2)          # (D, HWp) f32
        d = cost.shape[0]
        m = jnp.max(cost, axis=0, keepdims=True)
        e = jnp.exp(cost - m)
        denom = jnp.sum(e, axis=0, keepdims=True)
        prob = e / denom                                # exact softmax (exp(log_softmax))
        prob_ref[0] = prob
        pmax = jnp.max(prob, axis=0, keepdims=True)
        conf_ref[0] = pmax
        di = lax.broadcasted_iota(jnp.int32, prob.shape, 0)
        idx = jnp.min(jnp.where(prob >= pmax, di, d), axis=0, keepdims=True)
        onehot = di == idx
        depth_ref[0] = jnp.sum(jnp.where(onehot, dv_ref[0], 0.0), axis=0, keepdims=True)


def pallas_costreg_depth(cost, w_eff, dv_flat, masks, W):
    # cost: (B, V, D, HWp) bf16, w_eff: (V, 27) f32, dv_flat: (B, D, HWp) f32,
    # masks: (9, HWp) f32 -> depth (B,1,HWp), confidence (B,1,HWp), prob (B,D,HWp).
    B, V, D, HWp = cost.shape
    roll_shifts = _tap_roll_shifts(W, HWp)
    kern = functools.partial(_costreg_kernel, roll_shifts=roll_shifts)
    depth, conf, prob = pl.pallas_call(
        kern,
        out_shape=(jax.ShapeDtypeStruct((B, 1, HWp), jnp.float32),
                   jax.ShapeDtypeStruct((B, 1, HWp), jnp.float32),
                   jax.ShapeDtypeStruct((B, D, HWp), jnp.float32)),
        grid_spec=pltpu.PrefetchScalarGridSpec(
            num_scalar_prefetch=0,
            grid=(B, V),
            in_specs=[
                pl.BlockSpec((1, 1, D, HWp), lambda b, v: (b, v, 0, 0)),
                pl.BlockSpec((9, HWp), lambda b, v: (0, 0)),
                pl.BlockSpec((1, D, HWp), lambda b, v: (b, 0, 0)),
                pl.BlockSpec(memory_space=pltpu.MemorySpace.SMEM),
            ],
            out_specs=[pl.BlockSpec((1, 1, HWp), lambda b, v: (b, 0, 0)),
                       pl.BlockSpec((1, 1, HWp), lambda b, v: (b, 0, 0)),
                       pl.BlockSpec((1, D, HWp), lambda b, v: (b, 0, 0))],
            scratch_shapes=[pltpu.VMEM((3, D, HWp), jnp.float32)]),
        compiler_params=pltpu.CompilerParams(
            dimension_semantics=("parallel", "arbitrary"),
            vmem_limit_bytes=_vmem_limit_bytes()),
    )(cost, masks, dv_flat, w_eff)
    return depth, conf, prob


# ----------------------------------------------------------------------------
# Plain-JAX glue (homography warping / grid_sample; depth sampling)
# ----------------------------------------------------------------------------

def bilinear_sample_zeros(fea, px, py):
    # fea: (N, C, H, W);  px, py: (N, D, HW) pixel coords;  -> (N, C, D, HW)
    # equivalent to grid_sample(mode='bilinear', padding_mode='zeros', align_corners=True)
    B, C, H, W = fea.shape
    x0 = jnp.floor(px)
    y0 = jnp.floor(py)
    x1 = x0 + 1.0
    y1 = y0 + 1.0
    wx1 = px - x0
    wx0 = 1.0 - wx1
    wy1 = py - y0
    wy0 = 1.0 - wy1
    fea_flat = fea.reshape(B, C, H * W)

    def gather(ix, iy):
        valid = ((ix >= 0) & (ix <= W - 1) & (iy >= 0) & (iy <= H - 1)).astype(fea.dtype)
        ixc = jnp.clip(ix, 0, W - 1).astype(jnp.int32)
        iyc = jnp.clip(iy, 0, H - 1).astype(jnp.int32)
        flat = iyc * W + ixc  # (B, D, HW)
        g = jax.vmap(lambda f, i: jnp.take(f, i.reshape(-1), axis=1))(fea_flat, flat)
        g = g.reshape(B, C, flat.shape[1], flat.shape[2])
        return g * valid[:, None, :, :]

    return (gather(x0, y0) * (wx0 * wy0)[:, None]
            + gather(x1, y0) * (wx1 * wy0)[:, None]
            + gather(x0, y1) * (wx0 * wy1)[:, None]
            + gather(x1, y1) * (wx1 * wy1)[:, None])


def homo_warping_flat(src_fea, src_proj, ref_proj, depth_values):
    # TODO(synk): the bilinear grid_sample gather is data-dependent; kept in plain JAX.
    # src_fea: (N, C, H, W); projections: (N, 4, 4); depth_values: (N, D, H, W)
    # -> (N, C, D, H*W) float32 (already flattened over the spatial axis).
    B, C, H, W = src_fea.shape
    D = depth_values.shape[1]
    proj = src_proj @ jnp.linalg.inv(ref_proj)
    rot = proj[:, :3, :3]
    trans = proj[:, :3, 3]
    yy, xx = jnp.meshgrid(jnp.arange(H, dtype=jnp.float32),
                          jnp.arange(W, dtype=jnp.float32), indexing='ij')
    xyz = jnp.stack([xx.reshape(-1), yy.reshape(-1),
                     jnp.ones(H * W, jnp.float32)], axis=0)          # (3, HW)
    rot_xyz = jnp.einsum('bij,jn->bin', rot, xyz)                    # (N, 3, HW)
    rot_depth_xyz = rot_xyz[:, :, None, :] * depth_values.reshape(B, 1, D, H * W)
    proj_xyz = rot_depth_xyz + trans[:, :, None, None]               # (N, 3, D, HW)
    proj_xy = proj_xyz[:, :2] / proj_xyz[:, 2:3]
    px = proj_xy[:, 0]
    py = proj_xy[:, 1]
    return bilinear_sample_zeros(src_fea, px, py)                    # (N, C, D, HW)


def get_depth_range_samples(last_depth, ndepth, depth_inteval_pixel, shape):
    # TODO(synk): reference implementation not provided; standard CasMVSNet first-stage sampling.
    assert last_depth.ndim == 2, "only the first-stage (B, D) branch is exercised here"
    dmin = last_depth[:, 0]
    dmax = last_depth[:, -1]
    new_interval = (dmax - dmin) / (ndepth - 1)
    samples = dmin[:, None] + jnp.arange(ndepth, dtype=jnp.float32)[None, :] * new_interval[:, None]
    samples = jnp.broadcast_to(samples[:, :, None, None],
                               (last_depth.shape[0], ndepth, shape[0], shape[1]))
    return samples, new_interval


# ----------------------------------------------------------------------------
# Modules
# ----------------------------------------------------------------------------

class CostAgg:
    def __init__(self, in_channels, key):
        self.weights = []
        for i, c in enumerate(in_channels):
            k = jax.random.fold_in(key, i)
            self.weights.append(jax.random.normal(k, (1, c, 3, 3, 3), jnp.float32) * 0.05)

    def __call__(self, features, proj_matrices, depth_values, stage_idx):
        ref_feature, src_features = features[0], features[1:]
        B, C, H, W = ref_feature.shape
        V = len(src_features)
        HW = H * W
        HWp = _round_up(HW, 128)

        projs = [proj_matrices[:, i] for i in range(proj_matrices.shape[1])]
        ref_proj, src_projs = projs[0], projs[1:]
        ref_proj_new = ref_proj[:, 0].at[:, :3, :4].set(
            jnp.einsum('bij,bjk->bik', ref_proj[:, 1, :3, :3], ref_proj[:, 0, :3, :4]))
        src_proj_new = [sp[:, 0].at[:, :3, :4].set(
            jnp.einsum('bij,bjk->bik', sp[:, 1, :3, :3], sp[:, 0, :3, :4]))
            for sp in src_projs]

        # Fold the view axis into batch: one warp call, no stack of warped volumes.
        src_bv = jnp.stack(src_features, axis=1).reshape(B * V, C, H, W)
        srcp_bv = jnp.stack(src_proj_new, axis=1).reshape(B * V, 4, 4)
        refp_bv = jnp.repeat(ref_proj_new, V, axis=0)
        dv_bv = jnp.repeat(depth_values, V, axis=0)
        warped = homo_warping_flat(src_bv, srcp_bv, refp_bv, dv_bv)  # (BV, C, D, HW) f32

        # bf16 over HBM + lane pad to HWp (ref feature broadcast over D in-kernel).
        warped = jnp.pad(warped.astype(jnp.bfloat16),
                         ((0, 0), (0, 0), (0, 0), (0, HWp - HW)))
        ref_flat = jnp.pad(ref_feature.reshape(B, C, HW),
                           ((0, 0), (0, 0), (0, HWp - HW)))
        masks = _tap_masks(H, W, HWp)
        w_flat = self.weights[stage_idx][0].reshape(C, 27)
        # (B, V, D, HWp) bf16 lane-dense cost volume (flows straight into cost-reg).
        return pallas_costagg(ref_flat, warped, w_flat, masks, W)


class MVSNet:
    def __init__(self, ndepths, depth_interval_ratio, train_view=None, key=None):
        assert len(ndepths) == len(depth_interval_ratio)
        self.ndepths = ndepths
        self.depth_interval_ratio = depth_interval_ratio
        self.num_stage = len(ndepths)
        self.train_view = train_view
        # TODO(synk): FeatureNet / CostRegNet definitions were not provided; deterministic
        # stand-ins are used (avg-pool + 1x1-conv Pallas matmul; single 3x3x3 Pallas conv).
        self.feature_out_channels = [32, 16, 8]
        kf, kc, kr = jax.random.split(key, 3)
        self.feat_w = [jax.random.normal(jax.random.fold_in(kf, i), (8, c), jnp.float32) * 0.1
                       for i, c in enumerate(self.feature_out_channels)]
        self.cost_aggregation = CostAgg(self.feature_out_channels, kc)
        self.costreg_w = [jax.random.normal(jax.random.fold_in(kr, i),
                                            (1, train_view - 1, 3, 3, 3), jnp.float32) * 0.05
                          for i in range(self.num_stage)]

    def feature(self, imgs):
        # imgs: (B, NV, C, H, W) -> list over views of {stageN: (B, Cout, h, w)}
        B, NV, C, H, W = imgs.shape
        feats = [dict() for _ in range(NV)]
        for s in range(1, self.num_stage + 1):
            scale = 2 ** (3 - s)
            h, w = H // scale, W // scale
            pooled = imgs.reshape(B, NV, C, h, scale, w, scale).mean(axis=(4, 6))
            x = pooled.transpose(0, 1, 3, 4, 2).reshape(B * NV * h * w, C)
            x = jnp.pad(x, ((0, 0), (0, 8 - C)))          # pad Cin to 8 for the MXU matmul
            y = pallas_matmul(x, self.feat_w[s - 1])      # one call for all views
            y = y.reshape(B, NV, h, w, -1).transpose(0, 1, 4, 2, 3)
            for v in range(NV):
                feats[v]['stage{}'.format(s)] = y[:, v]
        return feats

    def __call__(self, imgs, proj_matrices, depth_values):
        depth_interval = (depth_values[0, -1] - depth_values[0, 0]) / depth_values.shape[1]
        features = self.feature(imgs)
        ori_shape = imgs[:, 0].shape[2:]
        outputs = {}
        last_depth = None
        for stage_idx in range(self.num_stage):
            features_stage = [feat['stage{}'.format(stage_idx + 1)] for feat in features]
            proj_matrices_stage = proj_matrices['stage{}'.format(stage_idx + 1)]
            stage_scale = 2 ** (3 - stage_idx - 1)
            stage_shape = [ori_shape[0] // int(stage_scale), ori_shape[1] // int(stage_scale)]
            if stage_idx == 0:
                last_depth = depth_values
            else:
                last_depth = lax.stop_gradient(last_depth)
            depth_range_samples, interval = get_depth_range_samples(
                last_depth=last_depth, ndepth=self.ndepths[stage_idx],
                depth_inteval_pixel=self.depth_interval_ratio[stage_idx] * depth_interval,
                shape=stage_shape)
            # TODO(synk): stage_idx > 0 bilinear resize of depth samples not exercised (single stage).
            cost_volume = self.cost_aggregation(features_stage, proj_matrices_stage,
                                                depth_range_samples, stage_idx)
            B, V, D, HWp = cost_volume.shape
            Hs, Ws = stage_shape
            HW = Hs * Ws
            test_view = V + 1
            _iter = False
            w_reg = self.costreg_w[stage_idx][0].reshape(self.train_view - 1, 27)
            if test_view > self.train_view:
                _iter = True  # TODO(synk): multi-view split (_iter) branch not exercised here.
            elif test_view < self.train_view:
                # The duplicated cost channels equal channel 0 and the stand-in
                # regularization conv is linear in its input channels, so fold the
                # duplicate-channel weights into channel 0 instead of repeating the
                # cost volume in HBM.
                extra = jnp.sum(w_reg[V:], axis=0)
                w_reg = w_reg[:V].at[0].add(extra)

            dv_flat = jnp.pad(depth_range_samples.reshape(B, D, HW),
                              ((0, 0), (0, 0), (0, HWp - HW)))
            masks = _tap_masks(Hs, Ws, HWp)
            # Fused cost regularization (stand-in Conv3d, reduced over the view grid
            # axis) + softmax / winner-take-all depth head: no cost_reg HBM round trip.
            depth_l, conf_l, prob_l = pallas_costreg_depth(cost_volume, w_reg,
                                                           dv_flat, masks, Ws)
            depth = depth_l[:, 0, :HW].reshape(B, Hs, Ws)
            conf = conf_l[:, 0, :HW].reshape(B, Hs, Ws)
            prob = prob_l[:, :, :HW].reshape(B, D, Hs, Ws)

            outputs_stage = {'depth': depth,
                             'photometric_confidence': conf,
                             'prob_volume': prob,
                             'depth_values': depth_range_samples,
                             'interval': interval}
            last_depth = depth
            outputs['stage{}'.format(stage_idx + 1)] = outputs_stage
            outputs.update(outputs_stage)
        return outputs


# ----------------------------------------------------------------------------
# Main
# ----------------------------------------------------------------------------

if __name__ == "__main__":
    key = jax.random.PRNGKey(0)
    B, NVIEW, C, H, W = 1, 3, 3, 16, 16
    ndepths = [8]
    depth_interval_ratio = [1.0]
    train_view = NVIEW

    net = MVSNet(ndepths, depth_interval_ratio, train_view=train_view,
                 key=jax.random.fold_in(key, 1))

    imgs = jax.random.uniform(jax.random.fold_in(key, 2),
                              (B, NVIEW, C, H, W), jnp.float32)

    # stage1 feature map is H/4 x W/4 = 4 x 4; simple intrinsics + small x-translations
    h1, w1 = H // 4, W // 4
    K = jnp.array([[2.0, 0.0, (w1 - 1) / 2.0, 0.0],
                   [0.0, 2.0, (h1 - 1) / 2.0, 0.0],
                   [0.0, 0.0, 1.0, 0.0],
                   [0.0, 0.0, 0.0, 1.0]], jnp.float32)

    def extr(tx):
        return jnp.eye(4, dtype=jnp.float32).at[0, 3].set(tx)

    views = [jnp.stack([extr(tx), K]) for tx in (0.0, 0.2, -0.2)]   # each (2, 4, 4)
    proj_stage1 = jnp.broadcast_to(jnp.stack(views)[None], (B, NVIEW, 2, 4, 4))
    proj_matrices = {'stage1': proj_stage1}

    depth_values = jnp.broadcast_to(
        jnp.linspace(1.0, 2.0, ndepths[0], dtype=jnp.float32)[None], (B, ndepths[0]))

    out = net(imgs, proj_matrices, depth_values)
    jax.block_until_ready((out['depth'], out['photometric_confidence'], out['prob_volume']))
    print("KERNEL_OK")
</pallas_src>

<mosaic_0001>
module attributes {stable_mosaic.version = 11 : i64} {
  func.func @_matmul_kernel(%arg0: i32, %arg1: memref<48x8xbf16, #tpu.memory_space<vmem>>, %arg2: memref<8x128xbf16, #tpu.memory_space<vmem>>, %arg3: memref<48x128xf32, #tpu.memory_space<vmem>>) attributes {dimension_semantics = [#tpu.dimension_semantics<parallel>], iteration_bounds = array<i64: 1>, scalar_prefetch = 0 : i64, scratch_operands = 0 : i64, tpu.core_type = #tpu.core_type<tc>, window_params = [{transform_indices = @transform_0, window_bounds = array<i64: 48, 8>}, {pipeline_mode = #tpu.pipeline_mode<synchronous>, transform_indices = @transform_1, window_bounds = array<i64: 8, 128>}, {transform_indices = @transform_2, window_bounds = array<i64: 48, 128>}]} {
    %c0 = arith.constant 0 : index
    %c0_0 = arith.constant 0 : index
    %0 = vector.load %arg1[%c0, %c0_0] : memref<48x8xbf16, #tpu.memory_space<vmem>>, vector<48x8xbf16>
    %c0_1 = arith.constant 0 : index
    %c0_2 = arith.constant 0 : index
    %1 = vector.load %arg2[%c0_1, %c0_2] : memref<8x128xbf16, #tpu.memory_space<vmem>>, vector<8x128xbf16>
    %cst = arith.constant dense<0.000000e+00> : vector<48x128xf32>
    %2 = tpu.matmul %0, %1, %cst {dimension_numbers = #tpu.dot_dimension_numbers<[1], [0], [0], [1], [0, 0, 1, 1], [], []>} : vector<48x8xbf16>, vector<8x128xbf16>, vector<48x128xf32> -> vector<48x128xf32>
    %c0_3 = arith.constant 0 : index
    %c0_4 = arith.constant 0 : index
    %3 = vector.load %arg3[%c0_3, %c0_4] : memref<48x128xf32, #tpu.memory_space<vmem>>, vector<48x128xf32>
    tpu.vector_store %arg3[%c0_3, %c0_4], %2 {strides = array<i32>} : memref<48x128xf32, #tpu.memory_space<vmem>>, vector<48x128xf32>,
    return
  }
  func.func @transform_0(%arg0: i32) -> (i32, i32) {
    %c0_i32 = arith.constant 0 : i32
    %c0_i32_0 = arith.constant 0 : i32
    return %arg0, %c0_i32 : i32, i32
  }
  func.func @transform_1(%arg0: i32) -> (i32, i32) {
    %c0_i32 = arith.constant 0 : i32
    %c0_i32_0 = arith.constant 0 : i32
    %c0_i32_1 = arith.constant 0 : i32
    return %c0_i32, %c0_i32_0 : i32, i32
  }
  func.func @transform_2(%arg0: i32) -> (i32, i32) {
    %c0_i32 = arith.constant 0 : i32
    %c0_i32_0 = arith.constant 0 : i32
    return %arg0, %c0_i32 : i32, i32
  }
}

</mosaic_0001>

<bundles_post_ra>
// kernel: tpu_custom_call.1
= control target key start
LH: loop header
LB: loop body
LE: loop exit
PB: predicated region body
PF: predicated region fallthrough
CT: control target
= control target key end

     0   :  { %vm45_vm0 = vcmask 1043456   ;;  %v184_v1 = vmov 0.0   ;;  %vm35_vm1 = vcmask 64512   ;;  %vm185_vm2 = vmmov 0   ;;  %s219_s0 = inlined_call_operand.vmem [shape: bf16[48,8], index: 0, kind: input, shape index: {}]   ;;  %s220_s1 = inlined_call_operand.vmem [shape: bf16[8,128], index: 1, kind: input, shape index: {}]   ;;  %s221_s2 = inlined_call_operand.hbm [shape: f32[48,128], index: 2, kind: output, shape index: {}]  }
   0x1   :  { %v19_v0 = vld [vmem:[%s220_s1] sm:$0xf]  ;;  %152 = vmatprep.subr.bf16.mxu1 %v184_v1  ;;  %138 = vmatprep.subr.bf16.mxu0 %v184_v1  ;;  %v159_v3 = vld [vmem:[%s219_s0 + $0x8] sm:$0xff]  }
   0x2   :  { %v47_v2 = vsel %vm45_vm0, %v19_v0, 0  ;;  %v160_v4 = vld [vmem:[%s219_s0] sm:$0xff]   ;;  %144 = vmatprep.mubr.msk.bf16.mxu1 %vm185_vm2, %v184_v1  ;;  %140 = vmatprep.mubr.msk.bf16.mxu0 %vm185_vm2, %v184_v1 }
   0x3   :  { %153 = vmatpush3.bf16.msra.mxu1 %v47_v2  ;;  %139 = vmatpush3.bf16.msra.mxu0 %v47_v2 }
   0x4   :  { %7 = vsyncpa [#allocation3], 0  ;;  %v161_v5 = vld [vmem:[%s219_s0 + $0x10] sm:$0xff]   ;;  %s186_s16 = smov [#allocation2]  }
   0x5   :  { %s117_s17 = sshll.u32 %s186_s16, 4  ;;  %s118_s17 = int_to_ptr.vmem [resolvable:$true] %s117_s17 }
   0x6   :  { %145 = vmatmul.mubr.msk.bf16.vlgmr.msra.gmra.mxu1 %vm35_vm1, %v159_v3  ;;  %141 = vmatmul.mubr.msk.bf16.vlgmr.msra.gmra.mxu0 %vm35_vm1, %v160_v4  ;;  %s162_s0 = scalar_lea.vmem %s118_s17, 768  ;;  %p167_p1 = scmp.lt.s32.totalorder %s118_s17, %s118_s17 }
   0x7   :  { %148 = vmatprep.mubr.msk.bf16.mxu1 %vm185_vm2, %v184_v1  ;;  %p163_p0 = scmp.ne.s32.totalorder %s118_s17, %s162_s0  ;;  %p168_p2 = scmp.lt.s32.totalorder %s162_s0, %s162_s0 }
   0x9   :  { %p169_p3 = por %p168_p2, %p167_p1 }
   0xb   :  { %p170_p4 = pnand %p169_p3, %p163_p0 }
   0xe   :  { %149 = vmatmul.mubr.msk.bf16.gmra.mxu1 %vm35_vm1, %v161_v5 }
  0xc6   :  { %v91_v6 = vpop.f32.mrf.mxu1  ;;  %v83_v7 = vpop.f32.mrf.mxu0 }
  0xc7   :  { %108 = vst [vmem:[#allocation2 + $0x10] sm:$0xff] %v91_v6  ;;  %106 = vst [vmem:[#allocation2] sm:$0xff] %v83_v7 }
  0xc8   :  { %v146_v8 = vpop.f32.mrf.mxu1  ;;  %v142_v9 = vpop.f32.mrf.mxu0 }
  0xca   :  { %v94_v10 = vpop.f32.mrf.mxu1  ;;  %v86_v11 = vpop.f32.mrf.mxu0 }
  0xcb   :  { %109 = vst [vmem:[#allocation2 + $0x18] sm:$0xff] %v94_v10  ;;  %107 = vst [vmem:[#allocation2 + $0x8] sm:$0xff] %v86_v11 }
  0xcc   :  { %v147_v12 = vpop.f32.mrf.mxu1  ;;  %v143_v13 = vpop.f32.mrf.mxu0 }
  0xce   :  { %v99_v14 = vpop.f32.mrf.mxu1 }
  0xcf   :  { %110 = vst [vmem:[#allocation2 + $0x20] sm:$0xff] %v99_v14 }
  0xd0   :  { %v150_v15 = vpop.f32.mrf.mxu1 }
  0xd2   :  { %v102_v16 = vpop.f32.mrf.mxu1 }
  0xd3   :  { %111 = vst [vmem:[#allocation2 + $0x28] sm:$0xff] %v102_v16 }
  0xd4   :  { %v151_v17 = vpop.f32.mrf.mxu1 }
  0xd5   :  { %173 = shalt.err (!%p170_p4)
}
  0xd6   :  { %s187_s18 = smov 128   ;;  %s188_s19 = smov 8  }
  0xd7   :  { %123 = dma.vmem_to_hbm [thread:$0]  %s118_s17, 768, %s221_s2, [#allocation3], %s187_s18, %s187_s18, %s188_s19  }
  0xd8   :  { %182 = dma.done.wait [#allocation3], 768  }
  0xd9   :  { %183 = vsyncadd [#allocation3], 4294966528 }
  0xda   :  { %127 = vsyncpa [#allocation3], 1 }

</bundles_post_ra>
